<compile_context>
chip_gen: v6e
topology: v6e:2x2x1
jax: 0.10.0
libtpu: 0.0.40
codegen_flags: <defaults>
</compile_context>

<pallas_src>
import math
import numpy as np
import jax
import jax.numpy as jnp
from jax.experimental import pallas as pl
from jax.experimental.pallas import tpu as pltpu  # noqa: F401  (not required at this size)

# small, forward-consistent shapes
B, S, D, H, F = 2, 8, 32, 4, 64      # batch, seq, d_model, heads, d_ff
DH = D // H
BS = B * S
EPS = 1e-5                            # nn.LayerNorm default eps


def _layernorm(x, g, b):
    mu = jnp.mean(x, axis=-1, keepdims=True)
    var = jnp.mean((x - mu) ** 2, axis=-1, keepdims=True)
    return (x - mu) * jax.lax.rsqrt(var + EPS) * g + b


def encoder_block_kernel(x_ref, bias_ref,
                         ln1_g_ref, ln1_b_ref,
                         wqkv_ref, bqkv_ref,
                         wo_ref, bo_ref,
                         ln2_g_ref, ln2_b_ref,
                         w1_ref, b1_ref, w2_ref, b2_ref,
                         out_ref):
    x = x_ref[...]                     # (BS, D)   batch folded into rows
    bias = bias_ref[...]               # (BS, BS)  additive mask: 0 keep / -1e9 drop

    # hoist all broadcast-style params once (JAX does not CSE broadcasts)
    ln1_g = ln1_g_ref[...]; ln1_b = ln1_b_ref[...]
    ln2_g = ln2_g_ref[...]; ln2_b = ln2_b_ref[...]
    bo = bo_ref[...]
    w1 = w1_ref[...]; b1 = b1_ref[...]
    w2 = w2_ref[...]; b2 = b2_ref[...]

    # ---- sublayer 0: x + self_attn(LN(x), mask) ----
    # TODO(synk): dropout omitted (identity, eval-mode semantics)
    xn = _layernorm(x, ln1_g, ln1_b)

    # single fused QKV projection: (16,32)@(32,96) + one bias add
    qkv = jnp.dot(xn, wqkv_ref[...], preferred_element_type=jnp.float32) + bqkv_ref[...]
    q_all = qkv[:, 0:D]                # (BS, D)
    k_all = qkv[:, D:2 * D]            # (BS, D)  (K bias removed exactly on host)
    v_all = qkv[:, 2 * D:3 * D]        # (BS, D)  (V bias folded into bo on host)

    scale = 1.0 / math.sqrt(DH)
    heads = []
    for h in range(H):                 # static unroll over 4 heads
        lo, hi = h * DH, (h + 1) * DH
        q_h = q_all[:, lo:hi]
        k_h = k_all[:, lo:hi]
        v_h = v_all[:, lo:hi]
        # q @ k^T as a contraction of the last dims (MXU handles the K-operand
        # orientation; no explicit per-head transpose emitted in user code)
        s = jax.lax.dot_general(q_h, k_h, (((1,), (1,)), ((), ())),
                                preferred_element_type=jnp.float32)
        s = s * scale + bias           # additive mask: no vcmp/vsel in the VALU
        s = s - jnp.max(s, axis=-1, keepdims=True)
        p = jnp.exp(s)
        p = p / jnp.sum(p, axis=-1, keepdims=True)     # exact softmax (matches ref)
        heads.append(jnp.dot(p, v_h, preferred_element_type=jnp.float32))  # (BS, DH)

    # assemble heads on the lane axis (4 x 8 lanes -> 32 lanes, one vreg width)
    # and do a single (16,32)@(32,32) output projection with un-split Wo.
    attn = jnp.concatenate(heads, axis=-1)             # (BS, D)
    x1 = x + jnp.dot(attn, wo_ref[...], preferred_element_type=jnp.float32) + bo

    # ---- sublayer 1: x + FFN(LN(x)) ----
    x1n = _layernorm(x1, ln2_g, ln2_b)
    hid = jnp.maximum(jnp.dot(x1n, w1, preferred_element_type=jnp.float32) + b1, 0.0)
    out_ref[...] = x1 + jnp.dot(hid, w2, preferred_element_type=jnp.float32) + b2


def encoder_block(x, mask, params):
    (ln1_g, ln1_b, wq, bq, wk, bk, wv, bv, wo, bo,
     ln2_g, ln2_b, w1, b1, w2, b2) = params

    # Host-side weight fusion: one (D, 3D) QKV weight; only the Q bias is kept
    # in the fused bias.  K bias dropped exactly (softmax row-constant);
    # V bias folded into the output bias: bo' = bo + bv @ Wo  (softmax rows
    # sum to 1, so this is exact up to ulps).
    wqkv = jnp.concatenate([wq, wk, wv], axis=1)                               # (D, 3D)
    bqkv = jnp.concatenate([bq, jnp.zeros_like(bk), jnp.zeros_like(bv)], axis=1)  # (1, 3D)
    bo_f = bo + bv @ wo                                                        # (1, D)

    # additive attention bias over the folded (B*S) token axis:
    #   0    where query and key belong to the same batch AND the key is kept,
    #   -1e9 otherwise (also blocks cross-batch attention after folding).
    keep = jnp.einsum('bc,bij->bicj', jnp.eye(B, dtype=mask.dtype), mask)
    bias = (keep.reshape(BS, BS) - 1.0) * 1e9

    x2d = x.reshape(BS, D)

    # Single invocation (no grid): all operands are tiny and live fully in VMEM.
    out2d = pl.pallas_call(
        encoder_block_kernel,
        out_shape=jax.ShapeDtypeStruct((BS, D), jnp.float32),
    )(x2d, bias, ln1_g, ln1_b, wqkv, bqkv, wo, bo_f,
      ln2_g, ln2_b, w1, b1, w2, b2)
    return out2d.reshape(B, S, D)


def reference(x, mask, params):
    (ln1_g, ln1_b, wq, bq, wk, bk, wv, bv, wo, bo,
     ln2_g, ln2_b, w1, b1, w2, b2) = params
    xn = _layernorm(x, ln1_g, ln1_b)
    q = (xn @ wq + bq).reshape(B, S, H, DH).transpose(0, 2, 1, 3)
    k = (xn @ wk + bk).reshape(B, S, H, DH).transpose(0, 2, 1, 3)
    v = (xn @ wv + bv).reshape(B, S, H, DH).transpose(0, 2, 1, 3)
    scores = jnp.einsum("bhqd,bhkd->bhqk", q, k) / math.sqrt(DH)
    scores = jnp.where(mask[:, None, :, :] == 0.0, -1e9, scores)
    p = jax.nn.softmax(scores, axis=-1)
    attn = jnp.einsum("bhqk,bhkd->bhqd", p, v).transpose(0, 2, 1, 3).reshape(B, S, D)
    x1 = x + (attn @ wo + bo)
    x1n = _layernorm(x1, ln2_g, ln2_b)
    return x1 + (jnp.maximum(x1n @ w1 + b1, 0.0) @ w2 + b2)


if __name__ == "__main__":
    key = jax.random.PRNGKey(0)
    ks = jax.random.split(key, 12)

    def init(k, shape, scale=0.1):
        return (scale * jax.random.normal(k, shape)).astype(jnp.float32)

    # params (biases / LN params kept 2D (1, D) for TPU-friendly layout)
    params = [
        jnp.ones((1, D), jnp.float32),             # ln1 gamma
        jnp.zeros((1, D), jnp.float32),            # ln1 beta
        init(ks[0], (D, D)), init(ks[1], (1, D)),  # Wq, bq
        init(ks[2], (D, D)), init(ks[3], (1, D)),  # Wk, bk
        init(ks[4], (D, D)), init(ks[5], (1, D)),  # Wv, bv
        init(ks[6], (D, D)), init(ks[7], (1, D)),  # Wo, bo
        jnp.ones((1, D), jnp.float32),             # ln2 gamma
        jnp.zeros((1, D), jnp.float32),            # ln2 beta
        init(ks[8], (D, F)), init(ks[9], (1, F)),   # W1, b1 (FFN)
        init(ks[10], (F, D)), init(ks[11], (1, D)), # W2, b2 (FFN)
    ]

    xk, _ = jax.random.split(key)
    x = jax.random.normal(xk, (B, S, D), jnp.float32)

    # padding mask: batch 0 sees all 8 tokens, batch 1 only the first 5
    lens = jnp.array([8, 5])
    keep = (jnp.arange(S)[None, :] < lens[:, None]).astype(jnp.float32)   # (B, S)
    mask = jnp.broadcast_to(keep[:, None, :], (B, S, S))                  # (B, S, S)

    out = jax.block_until_ready(encoder_block(x, mask, params))
    ref = reference(x, mask, params)
    np.testing.assert_allclose(np.asarray(out), np.asarray(ref), atol=1e-3, rtol=1e-3)
    print("KERNEL_OK")
</pallas_src>

<mosaic_0001>
module attributes {stable_mosaic.version = 11 : i64} {
  func.func @encoder_block_kernel(%arg0: memref<16x32xf32, #tpu.memory_space<vmem>>, %arg1: memref<16x16xf32, #tpu.memory_space<vmem>>, %arg2: memref<1x32xf32, #tpu.memory_space<vmem>>, %arg3: memref<1x32xf32, #tpu.memory_space<vmem>>, %arg4: memref<32x96xf32, #tpu.memory_space<vmem>>, %arg5: memref<1x96xf32, #tpu.memory_space<vmem>>, %arg6: memref<32x32xf32, #tpu.memory_space<vmem>>, %arg7: memref<1x32xf32, #tpu.memory_space<vmem>>, %arg8: memref<1x32xf32, #tpu.memory_space<vmem>>, %arg9: memref<1x32xf32, #tpu.memory_space<vmem>>, %arg10: memref<32x64xf32, #tpu.memory_space<vmem>>, %arg11: memref<1x64xf32, #tpu.memory_space<vmem>>, %arg12: memref<64x32xf32, #tpu.memory_space<vmem>>, %arg13: memref<1x32xf32, #tpu.memory_space<vmem>>, %arg14: memref<16x32xf32, #tpu.memory_space<vmem>>) attributes {dimension_semantics = [], scalar_prefetch = 0 : i64, scratch_operands = 0 : i64, tpu.core_type = #tpu.core_type<tc>} {
    %c0 = arith.constant 0 : index
    %c0_0 = arith.constant 0 : index
    %0 = vector.load %arg0[%c0, %c0_0] : memref<16x32xf32, #tpu.memory_space<vmem>>, vector<16x32xf32>
    %c0_1 = arith.constant 0 : index
    %c0_2 = arith.constant 0 : index
    %1 = vector.load %arg1[%c0_1, %c0_2] : memref<16x16xf32, #tpu.memory_space<vmem>>, vector<16x16xf32>
    %c0_3 = arith.constant 0 : index
    %c0_4 = arith.constant 0 : index
    %2 = vector.load %arg2[%c0_3, %c0_4] : memref<1x32xf32, #tpu.memory_space<vmem>>, vector<1x32xf32>
    %c0_5 = arith.constant 0 : index
    %c0_6 = arith.constant 0 : index
    %3 = vector.load %arg3[%c0_5, %c0_6] : memref<1x32xf32, #tpu.memory_space<vmem>>, vector<1x32xf32>
    %c0_7 = arith.constant 0 : index
    %c0_8 = arith.constant 0 : index
    %4 = vector.load %arg8[%c0_7, %c0_8] : memref<1x32xf32, #tpu.memory_space<vmem>>, vector<1x32xf32>
    %c0_9 = arith.constant 0 : index
    %c0_10 = arith.constant 0 : index
    %5 = vector.load %arg9[%c0_9, %c0_10] : memref<1x32xf32, #tpu.memory_space<vmem>>, vector<1x32xf32>
    %c0_11 = arith.constant 0 : index
    %c0_12 = arith.constant 0 : index
    %6 = vector.load %arg7[%c0_11, %c0_12] : memref<1x32xf32, #tpu.memory_space<vmem>>, vector<1x32xf32>
    %c0_13 = arith.constant 0 : index
    %c0_14 = arith.constant 0 : index
    %7 = vector.load %arg10[%c0_13, %c0_14] : memref<32x64xf32, #tpu.memory_space<vmem>>, vector<32x64xf32>
    %c0_15 = arith.constant 0 : index
    %c0_16 = arith.constant 0 : index
    %8 = vector.load %arg11[%c0_15, %c0_16] : memref<1x64xf32, #tpu.memory_space<vmem>>, vector<1x64xf32>
    %c0_17 = arith.constant 0 : index
    %c0_18 = arith.constant 0 : index
    %9 = vector.load %arg12[%c0_17, %c0_18] : memref<64x32xf32, #tpu.memory_space<vmem>>, vector<64x32xf32>
    %c0_19 = arith.constant 0 : index
    %c0_20 = arith.constant 0 : index
    %10 = vector.load %arg13[%c0_19, %c0_20] : memref<1x32xf32, #tpu.memory_space<vmem>>, vector<1x32xf32>
    %cst = arith.constant dense<0.000000e+00> : vector<16xf32>
    %11 = vector.multi_reduction <add>, %0, %cst [1] : vector<16x32xf32> to vector<16xf32>
    %12 = vector.shape_cast %11 : vector<16xf32> to vector<16x1xf32>
    %cst_21 = arith.constant 3.200000e+01 : f32
    %13 = vector.broadcast %cst_21 : f32 to vector<16x1xf32>
    %14 = arith.divf %12, %13 : vector<16x1xf32>
    %15 = vector.broadcast %14 : vector<16x1xf32> to vector<16x32xf32>
    %16 = arith.subf %0, %15 : vector<16x32xf32>
    %17 = arith.mulf %16, %16 : vector<16x32xf32>
    %cst_22 = arith.constant dense<0.000000e+00> : vector<16xf32>
    %18 = vector.multi_reduction <add>, %17, %cst_22 [1] : vector<16x32xf32> to vector<16xf32>
    %19 = vector.shape_cast %18 : vector<16xf32> to vector<16x1xf32>
    %cst_23 = arith.constant 3.200000e+01 : f32
    %20 = vector.broadcast %cst_23 : f32 to vector<16x1xf32>
    %21 = arith.divf %19, %20 : vector<16x1xf32>
    %22 = vector.broadcast %14 : vector<16x1xf32> to vector<16x32xf32>
    %23 = arith.subf %0, %22 : vector<16x32xf32>
    %cst_24 = arith.constant 9.99999974E-6 : f32
    %24 = vector.broadcast %cst_24 : f32 to vector<16x1xf32>
    %25 = arith.addf %21, %24 : vector<16x1xf32>
    %26 = math.rsqrt %25 : vector<16x1xf32>
    %27 = vector.broadcast %26 : vector<16x1xf32> to vector<16x32xf32>
    %28 = arith.mulf %23, %27 : vector<16x32xf32>
    %29 = vector.broadcast %2 : vector<1x32xf32> to vector<16x32xf32>
    %30 = arith.mulf %28, %29 : vector<16x32xf32>
    %31 = vector.broadcast %3 : vector<1x32xf32> to vector<16x32xf32>
    %32 = arith.addf %30, %31 : vector<16x32xf32>
    %c0_25 = arith.constant 0 : index
    %c0_26 = arith.constant 0 : index
    %33 = vector.load %arg4[%c0_25, %c0_26] : memref<32x96xf32, #tpu.memory_space<vmem>>, vector<32x96xf32>
    %cst_27 = arith.constant dense<0.000000e+00> : vector<16x96xf32>
    %34 = tpu.matmul %32, %33, %cst_27 {dimension_numbers = #tpu.dot_dimension_numbers<[1], [0], [0], [1], [0, 0, 1, 1], [], []>} : vector<16x32xf32>, vector<32x96xf32>, vector<16x96xf32> -> vector<16x96xf32>
    %c0_28 = arith.constant 0 : index
    %c0_29 = arith.constant 0 : index
    %35 = vector.load %arg5[%c0_28, %c0_29] : memref<1x96xf32, #tpu.memory_space<vmem>>, vector<1x96xf32>
    %36 = vector.broadcast %35 : vector<1x96xf32> to vector<16x96xf32>
    %37 = arith.addf %34, %36 : vector<16x96xf32>
    %38 = vector.extract_strided_slice %37 {offsets = [0, 0], sizes = [16, 32], strides = [1, 1]} : vector<16x96xf32> to vector<16x32xf32>
    %39 = vector.extract_strided_slice %37 {offsets = [0, 32], sizes = [16, 32], strides = [1, 1]} : vector<16x96xf32> to vector<16x32xf32>
    %40 = vector.extract_strided_slice %37 {offsets = [0, 64], sizes = [16, 32], strides = [1, 1]} : vector<16x96xf32> to vector<16x32xf32>
    %41 = vector.extract_strided_slice %38 {offsets = [0, 0], sizes = [16, 8], strides = [1, 1]} : vector<16x32xf32> to vector<16x8xf32>
    %42 = vector.extract_strided_slice %39 {offsets = [0, 0], sizes = [16, 8], strides = [1, 1]} : vector<16x32xf32> to vector<16x8xf32>
    %43 = vector.extract_strided_slice %40 {offsets = [0, 0], sizes = [16, 8], strides = [1, 1]} : vector<16x32xf32> to vector<16x8xf32>
    %cst_30 = arith.constant dense<0.000000e+00> : vector<16x16xf32>
    %44 = tpu.matmul %41, %42, %cst_30 {dimension_numbers = #tpu.dot_dimension_numbers<[1], [1], [0], [0], [0, 0, 1, 0], [], []>} : vector<16x8xf32>, vector<16x8xf32>, vector<16x16xf32> -> vector<16x16xf32>
    %cst_31 = arith.constant 0.353553385 : f32
    %45 = vector.broadcast %cst_31 : f32 to vector<16x16xf32>
    %46 = arith.mulf %44, %45 : vector<16x16xf32>
    %47 = arith.addf %46, %1 : vector<16x16xf32>
    %cst_32 = arith.constant dense<0xFF800000> : vector<16xf32>
    %48 = vector.multi_reduction <maximumf>, %47, %cst_32 [1] : vector<16x16xf32> to vector<16xf32>
    %49 = vector.shape_cast %48 : vector<16xf32> to vector<16x1xf32>
    %50 = vector.broadcast %49 : vector<16x1xf32> to vector<16x16xf32>
    %51 = arith.subf %47, %50 : vector<16x16xf32>
    %52 = math.exp %51 : vector<16x16xf32>
    %cst_33 = arith.constant dense<0.000000e+00> : vector<16xf32>
    %53 = vector.multi_reduction <add>, %52, %cst_33 [1] : vector<16x16xf32> to vector<16xf32>
    %54 = vector.shape_cast %53 : vector<16xf32> to vector<16x1xf32>
    %55 = vector.broadcast %54 : vector<16x1xf32> to vector<16x16xf32>
    %56 = arith.divf %52, %55 : vector<16x16xf32>
    %cst_34 = arith.constant dense<0.000000e+00> : vector<16x8xf32>
    %57 = tpu.matmul %56, %43, %cst_34 {dimension_numbers = #tpu.dot_dimension_numbers<[1], [0], [0], [1], [0, 0, 1, 1], [], []>} : vector<16x16xf32>, vector<16x8xf32>, vector<16x8xf32> -> vector<16x8xf32>
    %58 = vector.extract_strided_slice %38 {offsets = [0, 8], sizes = [16, 8], strides = [1, 1]} : vector<16x32xf32> to vector<16x8xf32>
    %59 = vector.extract_strided_slice %39 {offsets = [0, 8], sizes = [16, 8], strides = [1, 1]} : vector<16x32xf32> to vector<16x8xf32>
    %60 = vector.extract_strided_slice %40 {offsets = [0, 8], sizes = [16, 8], strides = [1, 1]} : vector<16x32xf32> to vector<16x8xf32>
    %cst_35 = arith.constant dense<0.000000e+00> : vector<16x16xf32>
    %61 = tpu.matmul %58, %59, %cst_35 {dimension_numbers = #tpu.dot_dimension_numbers<[1], [1], [0], [0], [0, 0, 1, 0], [], []>} : vector<16x8xf32>, vector<16x8xf32>, vector<16x16xf32> -> vector<16x16xf32>
    %cst_36 = arith.constant 0.353553385 : f32
    %62 = vector.broadcast %cst_36 : f32 to vector<16x16xf32>
    %63 = arith.mulf %61, %62 : vector<16x16xf32>
    %64 = arith.addf %63, %1 : vector<16x16xf32>
    %cst_37 = arith.constant dense<0xFF800000> : vector<16xf32>
    %65 = vector.multi_reduction <maximumf>, %64, %cst_37 [1] : vector<16x16xf32> to vector<16xf32>
    %66 = vector.shape_cast %65 : vector<16xf32> to vector<16x1xf32>
    %67 = vector.broadcast %66 : vector<16x1xf32> to vector<16x16xf32>
    %68 = arith.subf %64, %67 : vector<16x16xf32>
    %69 = math.exp %68 : vector<16x16xf32>
    %cst_38 = arith.constant dense<0.000000e+00> : vector<16xf32>
    %70 = vector.multi_reduction <add>, %69, %cst_38 [1] : vector<16x16xf32> to vector<16xf32>
    %71 = vector.shape_cast %70 : vector<16xf32> to vector<16x1xf32>
    %72 = vector.broadcast %71 : vector<16x1xf32> to vector<16x16xf32>
    %73 = arith.divf %69, %72 : vector<16x16xf32>
    %cst_39 = arith.constant dense<0.000000e+00> : vector<16x8xf32>
    %74 = tpu.matmul %73, %60, %cst_39 {dimension_numbers = #tpu.dot_dimension_numbers<[1], [0], [0], [1], [0, 0, 1, 1], [], []>} : vector<16x16xf32>, vector<16x8xf32>, vector<16x8xf32> -> vector<16x8xf32>
    %75 = vector.extract_strided_slice %38 {offsets = [0, 16], sizes = [16, 8], strides = [1, 1]} : vector<16x32xf32> to vector<16x8xf32>
    %76 = vector.extract_strided_slice %39 {offsets = [0, 16], sizes = [16, 8], strides = [1, 1]} : vector<16x32xf32> to vector<16x8xf32>
    %77 = vector.extract_strided_slice %40 {offsets = [0, 16], sizes = [16, 8], strides = [1, 1]} : vector<16x32xf32> to vector<16x8xf32>
    %cst_40 = arith.constant dense<0.000000e+00> : vector<16x16xf32>
    %78 = tpu.matmul %75, %76, %cst_40 {dimension_numbers = #tpu.dot_dimension_numbers<[1], [1], [0], [0], [0, 0, 1, 0], [], []>} : vector<16x8xf32>, vector<16x8xf32>, vector<16x16xf32> -> vector<16x16xf32>
    %cst_41 = arith.constant 0.353553385 : f32
    %79 = vector.broadcast %cst_41 : f32 to vector<16x16xf32>
    %80 = arith.mulf %78, %79 : vector<16x16xf32>
    %81 = arith.addf %80, %1 : vector<16x16xf32>
    %cst_42 = arith.constant dense<0xFF800000> : vector<16xf32>
    %82 = vector.multi_reduction <maximumf>, %81, %cst_42 [1] : vector<16x16xf32> to vector<16xf32>
    %83 = vector.shape_cast %82 : vector<16xf32> to vector<16x1xf32>
    %84 = vector.broadcast %83 : vector<16x1xf32> to vector<16x16xf32>
    %85 = arith.subf %81, %84 : vector<16x16xf32>
    %86 = math.exp %85 : vector<16x16xf32>
    %cst_43 = arith.constant dense<0.000000e+00> : vector<16xf32>
    %87 = vector.multi_reduction <add>, %86, %cst_43 [1] : vector<16x16xf32> to vector<16xf32>
    %88 = vector.shape_cast %87 : vector<16xf32> to vector<16x1xf32>
    %89 = vector.broadcast %88 : vector<16x1xf32> to vector<16x16xf32>
    %90 = arith.divf %86, %89 : vector<16x16xf32>
    %cst_44 = arith.constant dense<0.000000e+00> : vector<16x8xf32>
    %91 = tpu.matmul %90, %77, %cst_44 {dimension_numbers = #tpu.dot_dimension_numbers<[1], [0], [0], [1], [0, 0, 1, 1], [], []>} : vector<16x16xf32>, vector<16x8xf32>, vector<16x8xf32> -> vector<16x8xf32>
    %92 = vector.extract_strided_slice %38 {offsets = [0, 24], sizes = [16, 8], strides = [1, 1]} : vector<16x32xf32> to vector<16x8xf32>
    %93 = vector.extract_strided_slice %39 {offsets = [0, 24], sizes = [16, 8], strides = [1, 1]} : vector<16x32xf32> to vector<16x8xf32>
    %94 = vector.extract_strided_slice %40 {offsets = [0, 24], sizes = [16, 8], strides = [1, 1]} : vector<16x32xf32> to vector<16x8xf32>
    %cst_45 = arith.constant dense<0.000000e+00> : vector<16x16xf32>
    %95 = tpu.matmul %92, %93, %cst_45 {dimension_numbers = #tpu.dot_dimension_numbers<[1], [1], [0], [0], [0, 0, 1, 0], [], []>} : vector<16x8xf32>, vector<16x8xf32>, vector<16x16xf32> -> vector<16x16xf32>
    %cst_46 = arith.constant 0.353553385 : f32
    %96 = vector.broadcast %cst_46 : f32 to vector<16x16xf32>
    %97 = arith.mulf %95, %96 : vector<16x16xf32>
    %98 = arith.addf %97, %1 : vector<16x16xf32>
    %cst_47 = arith.constant dense<0xFF800000> : vector<16xf32>
    %99 = vector.multi_reduction <maximumf>, %98, %cst_47 [1] : vector<16x16xf32> to vector<16xf32>
    %100 = vector.shape_cast %99 : vector<16xf32> to vector<16x1xf32>
    %101 = vector.broadcast %100 : vector<16x1xf32> to vector<16x16xf32>
    %102 = arith.subf %98, %101 : vector<16x16xf32>
    %103 = math.exp %102 : vector<16x16xf32>
    %cst_48 = arith.constant dense<0.000000e+00> : vector<16xf32>
    %104 = vector.multi_reduction <add>, %103, %cst_48 [1] : vector<16x16xf32> to vector<16xf32>
    %105 = vector.shape_cast %104 : vector<16xf32> to vector<16x1xf32>
    %106 = vector.broadcast %105 : vector<16x1xf32> to vector<16x16xf32>
    %107 = arith.divf %103, %106 : vector<16x16xf32>
    %cst_49 = arith.constant dense<0.000000e+00> : vector<16x8xf32>
    %108 = tpu.matmul %107, %94, %cst_49 {dimension_numbers = #tpu.dot_dimension_numbers<[1], [0], [0], [1], [0, 0, 1, 1], [], []>} : vector<16x16xf32>, vector<16x8xf32>, vector<16x8xf32> -> vector<16x8xf32>
    %109 = tpu.concatenate %57, %74, %91, %108 in 1 : vector<16x8xf32>, vector<16x8xf32>, vector<16x8xf32>, vector<16x8xf32> -> vector<16x32xf32>
    %c0_50 = arith.constant 0 : index
    %c0_51 = arith.constant 0 : index
    %110 = vector.load %arg6[%c0_50, %c0_51] : memref<32x32xf32, #tpu.memory_space<vmem>>, vector<32x32xf32>
    %cst_52 = arith.constant dense<0.000000e+00> : vector<16x32xf32>
    %111 = tpu.matmul %109, %110, %cst_52 {dimension_numbers = #tpu.dot_dimension_numbers<[1], [0], [0], [1], [0, 0, 1, 1], [], []>} : vector<16x32xf32>, vector<32x32xf32>, vector<16x32xf32> -> vector<16x32xf32>
    %112 = arith.addf %0, %111 : vector<16x32xf32>
    %113 = vector.broadcast %6 : vector<1x32xf32> to vector<16x32xf32>
    %114 = arith.addf %112, %113 : vector<16x32xf32>
    %cst_53 = arith.constant dense<0.000000e+00> : vector<16xf32>
    %115 = vector.multi_reduction <add>, %114, %cst_53 [1] : vector<16x32xf32> to vector<16xf32>
    %116 = vector.shape_cast %115 : vector<16xf32> to vector<16x1xf32>
    %cst_54 = arith.constant 3.200000e+01 : f32
    %117 = vector.broadcast %cst_54 : f32 to vector<16x1xf32>
    %118 = arith.divf %116, %117 : vector<16x1xf32>
    %119 = vector.broadcast %118 : vector<16x1xf32> to vector<16x32xf32>
    %120 = arith.subf %114, %119 : vector<16x32xf32>
    %121 = arith.mulf %120, %120 : vector<16x32xf32>
    %cst_55 = arith.constant dense<0.000000e+00> : vector<16xf32>
    %122 = vector.multi_reduction <add>, %121, %cst_55 [1] : vector<16x32xf32> to vector<16xf32>
    %123 = vector.shape_cast %122 : vector<16xf32> to vector<16x1xf32>
    %cst_56 = arith.constant 3.200000e+01 : f32
    %124 = vector.broadcast %cst_56 : f32 to vector<16x1xf32>
    %125 = arith.divf %123, %124 : vector<16x1xf32>
    %126 = vector.broadcast %118 : vector<16x1xf32> to vector<16x32xf32>
    %127 = arith.subf %114, %126 : vector<16x32xf32>
    %cst_57 = arith.constant 9.99999974E-6 : f32
    %128 = vector.broadcast %cst_57 : f32 to vector<16x1xf32>
    %129 = arith.addf %125, %128 : vector<16x1xf32>
    %130 = math.rsqrt %129 : vector<16x1xf32>
    %131 = vector.broadcast %130 : vector<16x1xf32> to vector<16x32xf32>
    %132 = arith.mulf %127, %131 : vector<16x32xf32>
    %133 = vector.broadcast %4 : vector<1x32xf32> to vector<16x32xf32>
    %134 = arith.mulf %132, %133 : vector<16x32xf32>
    %135 = vector.broadcast %5 : vector<1x32xf32> to vector<16x32xf32>
    %136 = arith.addf %134, %135 : vector<16x32xf32>
    %cst_58 = arith.constant dense<0.000000e+00> : vector<16x64xf32>
    %137 = tpu.matmul %136, %7, %cst_58 {dimension_numbers = #tpu.dot_dimension_numbers<[1], [0], [0], [1], [0, 0, 1, 1], [], []>} : vector<16x32xf32>, vector<32x64xf32>, vector<16x64xf32> -> vector<16x64xf32>
    %138 = vector.broadcast %8 : vector<1x64xf32> to vector<16x64xf32>
    %139 = arith.addf %137, %138 : vector<16x64xf32>
    %cst_59 = arith.constant 0.000000e+00 : f32
    %140 = vector.broadcast %cst_59 : f32 to vector<16x64xf32>
    %141 = arith.maximumf %139, %140 : vector<16x64xf32>
    %cst_60 = arith.constant dense<0.000000e+00> : vector<16x32xf32>
    %142 = tpu.matmul %141, %9, %cst_60 {dimension_numbers = #tpu.dot_dimension_numbers<[1], [0], [0], [1], [0, 0, 1, 1], [], []>} : vector<16x64xf32>, vector<64x32xf32>, vector<16x32xf32> -> vector<16x32xf32>
    %143 = arith.addf %114, %142 : vector<16x32xf32>
    %144 = vector.broadcast %10 : vector<1x32xf32> to vector<16x32xf32>
    %145 = arith.addf %143, %144 : vector<16x32xf32>
    %c0_61 = arith.constant 0 : index
    %c0_62 = arith.constant 0 : index
    %146 = vector.load %arg14[%c0_61, %c0_62] : memref<16x32xf32, #tpu.memory_space<vmem>>, vector<16x32xf32>
    tpu.vector_store %arg14[%c0_61, %c0_62], %145 {strides = array<i32>} : memref<16x32xf32, #tpu.memory_space<vmem>>, vector<16x32xf32>,
    return
  }
}

</mosaic_0001>

<bundles_post_ra>
// kernel: tpu_custom_call.1
= control target key start
LH: loop header
LB: loop body
LE: loop exit
PB: predicated region body
PF: predicated region fallthrough
CT: control target
= control target key end

     0   :  { %19 = vsyncpa [#allocation3], 0  ;;  %s2089_s0 = inlined_call_operand.hbm [shape: f32[16,32], index: 0, kind: input, shape index: {}]   ;;  %s2090_s1 = inlined_call_operand.hbm [shape: f32[16,16], index: 1, kind: input, shape index: {}]   ;;  %s2091_s2 = inlined_call_operand.vmem [shape: f32[1,32], index: 2, kind: input, shape index: {}]   ;;  %s2092_s3 = inlined_call_operand.vmem [shape: f32[1,32], index: 3, kind: input, shape index: {}]   ;;  %s2093_s4 = inlined_call_operand.vmem [shape: f32[32,96], index: 4, kind: input, shape index: {}]   ;;  %s2094_s5 = inlined_call_operand.vmem [shape: f32[1,96], index: 5, kind: input, shape index: {}]   ;;  %s2095_s6 = inlined_call_operand.vmem [shape: f32[32,32], index: 6, kind: input, shape index: {}]   ;;  %s2096_s7 = inlined_call_operand.vmem [shape: f32[1,32], index: 7, kind: input, shape index: {}]   ;;  %s2097_s8 = inlined_call_operand.vmem [shape: f32[1,32], index: 8, kind: input, shape index: {}]   ;;  %s2098_s9 = inlined_call_operand.vmem [shape: f32[1,32], index: 9, kind: input, shape index: {}]   ;;  %s2099_s10 = inlined_call_operand.vmem [shape: f32[32,64], index: 10, kind: input, shape index: {}]   ;;  %s2100_s11 = inlined_call_operand.vmem [shape: f32[1,64], index: 11, kind: input, shape index: {}]   ;;  %s2101_s12 = inlined_call_operand.vmem [shape: f32[64,32], index: 12, kind: input, shape index: {}]   ;;  %s2102_s13 = inlined_call_operand.vmem [shape: f32[1,32], index: 13, kind: input, shape index: {}]   ;;  %s2103_s14 = inlined_call_operand.hbm [shape: f32[16,32], index: 14, kind: output, shape index: {}]  }
   0x1   :  { %20 = vsyncpa [#allocation6], 0 }
   0x2   :  { %21 = vsyncpa [#allocation4], 0  ;;  %s1752_s29 = smov [#allocation2]  }
   0x3   :  { %s27_s30 = sshll.u32 %s1752_s29, 4  ;;  %s28_s30 = int_to_ptr.vmem [resolvable:$true] %s27_s30 }
   0x4   :  { %s1694_s15 = scalar_lea.vmem %s28_s30, 256  ;;  %p1699_p1 = scmp.lt.s32.totalorder %s28_s30, %s28_s30 }
   0x5   :  { %p1695_p0 = scmp.ne.s32.totalorder %s28_s30, %s1694_s15  ;;  %p1700_p2 = scmp.lt.s32.totalorder %s1694_s15, %s1694_s15 }
   0x7   :  { %p1701_p3 = por %p1700_p2, %p1699_p1 }
   0x9   :  { %p1702_p4 = pnand %p1701_p3, %p1695_p0 }
   0xb   :  { %1705 = shalt.err (!%p1702_p4)
}
   0xc   :  { %s1753_s16 = smov 128   ;;  %s1754_s17 = smov 8  }
   0xd   :  { %33 = dma.hbm_to_vmem [thread:$0]  %s2089_s0, 256, %s28_s30, [#allocation3], %s1753_s16, %s1753_s16, %s1754_s17  }
   0xe   :  { %s1755_s20 = smov [#allocation5]  }
   0xf   :  { %s39_s21 = sshll.u32 %s1755_s20, 4  ;;  %s40_s21 = int_to_ptr.vmem [resolvable:$true] %s39_s21 }
  0x10   :  { %s1714_s22 = scalar_lea.vmem %s40_s21, 256  ;;  %p1719_p6 = scmp.lt.s32.totalorder %s40_s21, %s40_s21 }
  0x11   :  { %p1715_p5 = scmp.ne.s32.totalorder %s40_s21, %s1714_s22  ;;  %p1720_p7 = scmp.lt.s32.totalorder %s1714_s22, %s1714_s22 }
  0x13   :  { %p1721_p8 = por %p1720_p7, %p1719_p6 }
  0x15   :  { %p1722_p9 = pnand %p1721_p8, %p1715_p5 }
  0x17   :  { %1725 = shalt.err (!%p1722_p9)
}
  0x18   :  { %45 = dma.hbm_to_vmem [thread:$0]  %s2090_s1, 256, %s40_s21, [#allocation6], %s1753_s16, %s1753_s16, %s1754_s17  }
  0x19   :  { %1746 = dma.done.wait [#allocation3], 256  }
  0x1a   :  { %1747 = vsyncadd [#allocation3], 4294967040 }
  0x1b   :  { %1748 = dma.done.wait [#allocation6], 256  }
  0x1c   :  { %1749 = vsyncadd [#allocation6], 4294967040  ;;  %vm99_vm0 = vcmask 261120   ;;  %v1857_v0 = vld [vmem:[#allocation2] sm:$0xff]  ;;  %v1859_v1 = vld [vmem:[#allocation2 + $0x8] sm:$0xff]  ;;  %vm241_vm1 = vcmask 64512  }
  0x1d   :  { %v100_v2 = vsel %vm99_vm0, %v1857_v0, 0.0  ;;  %v103_v3 = vsel %vm99_vm0, %v1859_v1, 0.0  ;;  %v146_v14 = vld [vmem:[%s2093_s4 + $0x18] sm:$0xff]  ;;  %v145_v15 = vld [vmem:[%s2093_s4 + $0x10] sm:$0xff]  ;;  %v144_v16 = vld [vmem:[%s2093_s4 + $0x8] sm:$0xff]  ;;  %s1758_s22 = smov 88  }
  0x1e   :  { %101 = vadd.xlane.f32.xlu0 %v100_v2  ;;  %1520 = vmatprep.subr.mxu1 %v146_v14  ;;  %v143_v17 = vld [vmem:[%s2093_s4] sm:$0xff]  ;;  %v1916_v46 = vld [vmem:[#allocation5 + $0x8] sm:$0xff]  ;;  %vm329_vm2 = vcmask 130048   ;;  %v1918_v49 = vld [vmem:[#allocation5] sm:$0xff]  ;;  %s1760_s23 = smov 56   ;;  %s1761_s24 = smov 80  }
  0x1f   :  { %1521 = vmatpush3.msra.mxu1 %v146_v14  ;;  %v1420_v25 = vld [vmem:[%s2091_s2] ss:$0 sm:$0xff]  ;;  %s1756_s2 = smov 96   ;;  %s1762_s0 = smov 112   ;;  %vm1079_vm3 = vcmask 195584   ;;  %vm1308_vm4 = vcmask 523264  }
  0x20   :  { %1522 = vmatprep.subr.mxu1 %v145_v15  ;;  %v1421_v27 = vld [vmem:[%s2092_s3] ss:$0 sm:$0xff]  ;;  %s1757_s3 = smov 120   ;;  %s1763_s1 = smov 48  }
  0x21   :  { %1523 = vmatpush3.msra.mxu1 %v145_v15  ;;  %v1422_v34 = vld [vmem:[%s2094_s5] ss:$0 sm:$0xff]  ;;  %s1759_s5 = smov 64   ;;  %s1764_s25 = smov 72  }
  0x22   :  { %104 = vadd.xlane.f32.xlu0 %v103_v3  ;;  %1524 = vmatprep.subr.mxu1 %v144_v16  ;;  %s1765_s26 = smov 104   ;;  %s1766_s27 = smov 40  }
  0x23   :  { %1525 = vmatpush3.msra.mxu1 %v144_v16  ;;  %s1767_s28 = smov 16  }
  0x24   :  { %1526 = vmatprep.subr.mxu1 %v143_v17 }
  0x25   :  { %1527 = vmatpush3.msra.mxu1 %v143_v17 }
  0xa7   :  { %v102_v4 = vpop.xlane.xlu0 %101 }
  0xa8   :  { %v107_v5 = vmul.f32 0.03125, %v102_v4 }
  0xaa   :  { %v109_v6 = vsub.f32 %v1857_v0, %v107_v5 }
  0xab   :  { %v105_v7 = vpop.xlane.xlu0 %104 }
  0xac   :  { %v108_v8 = vmul.f32 0.03125, %v105_v7  ;;  %v111_v9 = vmul.f32 %v109_v6, %v109_v6 }
  0xae   :  { %v110_v10 = vsub.f32 %v1859_v1, %v108_v8  ;;  %v113_v11 = vsel %vm99_vm0, %v111_v9, 0.0 }
  0xaf   :  { %114 = vadd.xlane.f32.xlu1 %v113_v11 }
  0xb0   :  { %v112_v12 = vmul.f32 %v110_v10, %v110_v10 }
  0xb2   :  { %v116_v13 = vsel %vm99_vm0, %v112_v12, 0.0 }
  0xb3   :  { %117 = vadd.xlane.f32.xlu1 %v116_v13 }
 0x138   :  { %v115_v18 = vpop.xlane.xlu1 %114 }
 0x139   :  { %v119_v19 = vmul.f32 0.03125, %v115_v18 }
 0x13b   :  { %v121_v20 = vadd.f32 1e-05, %v119_v19 }
 0x13c   :  { %v118_v21 = vpop.xlane.xlu1 %117 }
 0x13d   :  { %1646 = vrsqrt.f32 %v121_v20  ;;  %v120_v22 = vmul.f32 0.03125, %v118_v21 }
 0x13f   :  { %v122_v23 = vadd.f32 1e-05, %v120_v22 }
 0x141   :  { %1648 = vrsqrt.f32 %v122_v23 }
 0x14a   :  { %v1647_v24 = vpop.eup %1646 }
 0x14b   :  { %v125_v26 = vmul.f32 %v1647_v24, %v109_v6 }
 0x14d   :  { %v133_v28 = vmul.f32 %v1420_v25, %v125_v26 }
 0x14e   :  { %v1649_v29 = vpop.eup %1648 }
 0x14f   :  { %v126_v30 = vmul.f32 %v1649_v29, %v110_v10  ;;  %v141_v31 = vadd.f32 %v1421_v27, %v133_v28 }
 0x151   :  { %v134_v32 = vmul.f32 %v1420_v25, %v126_v30  ;;  %1528 = vmatprep.mubr.msk.f32.mxu1 %vm99_vm0, %v141_v31 }
 0x153   :  { %v142_v33 = vadd.f32 %v1421_v27, %v134_v32 }
 0x155   :  { %1529 = vmatmul.mubr.msk.f32.vlgmr.msra.gmra.mxu1 %vm99_vm0, %v142_v33 }
 0x215   :  { %v1530_v35 = vpop.f32.mrf.mxu1 }
 0x216   :  { %v1892_v36 = vadd.f32 %v1530_v35, %v1422_v34 }
 0x217   :  { %v226_v37 = vpop.f32.mrf.mxu1 }
 0x218   :  { %v1894_v38 = vadd.f32 %v1422_v34, %v226_v37  ;;  %239 = vrot.lane.b32.xlu0 %v1892_v36, %s1756_s2 }
 0x21a   :  { %237 = vrot.lane.b32.xlu1 %v1894_v38, %s1756_s2  ;;  %1535 = vmatprep.mubr.msk.f32.mxu1 %vm241_vm1, %v1894_v38  ;;  %s1768_s2 = smov 24  }
 0x21c   :  { %439 = vrot.lane.b32.xlu0 %v1894_v38, %s1757_s3 }
 0x21e   :  { %445 = vrot.lane.b32.xlu1 %v1892_v36, %s1758_s22 }
 0x222   :  { %443 = vrot.lane.b32.xlu1 %v1894_v38, %s1758_s22 }
 0x226   :  { %441 = vrot.lane.b32.xlu1 %v1892_v36, %s1757_s3 }
 0x28a   :  { %v240_v39 = vpop.permute.xlu0 %239 }
 0x28b   :  { %1531 = vmatprep.subr.msk.mxu1 %vm241_vm1, %v240_v39 }
 0x28c   :  { %1532 = vmatpush3.xpose.msk.msra.mxu1 %vm241_vm1, %v240_v39  ;;  %v238_v40 = vpop.permute.xlu1 %237 }
 0x28d   :  { %1533 = vmatprep.subr.msk.mxu1 %vm241_vm1, %v238_v40 }
 0x28e   :  { %v440_v42 = vpop.permute.xlu0 %439 }
 0x290   :  { %1534 = vmatpush3.xpose.msk.msra.mxu1 %vm241_vm1, %v238_v40  ;;  %v446_v41 = vpop.permute.xlu1 %445 }
 0x291   :  { %1545 = vmatprep.subr.msk.mxu1 %vm241_vm1, %v446_v41 }
 0x293   :  { %1536 = vmatmul.mubr.msk.f32.vlgmr.msra.gmra.mxu1 %vm241_vm1, %v1892_v36 }
 0x294   :  { %v444_v43 = vpop.permute.xlu1 %443  ;;  %1546 = vmatpush3.xpose.msk.msra.mxu1 %vm241_vm1, %v446_v41  ;;  %1549 = vmatprep.mubr.msk.f32.mxu1 %vm241_vm1, %v440_v42 }
 0x295   :  { %1547 = vmatprep.subr.msk.mxu1 %vm241_vm1, %v444_v43 }
 0x298   :  { %1548 = vmatpush3.xpose.msk.msra.mxu1 %vm241_vm1, %v444_v43  ;;  %v442_v44 = vpop.permute.xlu1 %441 }
 0x29b   :  { %1550 = vmatmul.mubr.msk.f32.vlgmr.msra.gmra.mxu1 %vm241_vm1, %v442_v44 }
 0x353   :  { %v1537_v45 = vpop.f32.mrf.mxu1 }
 0x354   :  { %v326_v47 = vmul.f32 0.35355338, %v1537_v45 }
 0x355   :  { %v316_v48 = vpop.f32.mrf.mxu1 }
 0x356   :  { %v325_v50 = vmul.f32 0.35355338, %v316_v48  ;;  %v328_v51 = vadd.f32 %v326_v47, %v1916_v46 }
 0x358   :  { %v333_v52 = vsel %vm329_vm2, %v328_v51, -inf  ;;  %v327_v53 = vadd.f32 %v325_v50, %v1918_v49 }
 0x359   :  { %334 = vmax.xlane.f32.xlu1 %v333_v52 }
 0x35a   :  { %v330_v54 = vsel %vm329_vm2, %v327_v53, -inf }
 0x35b   :  { %v1551_v55 = vpop.f32.mrf.mxu1  ;;  %331 = vmax.xlane.f32.xlu0 %v330_v54 }
 0x35c   :  { %v531_v57 = vmul.f32 0.35355338, %v1551_v55 }
 0x35d   :  { %v521_v56 = vpop.f32.mrf.mxu1 }
 0x35e   :  { %v530_v58 = vmul.f32 0.35355338, %v521_v56  ;;  %v533_v61 = vadd.f32 %v531_v57, %v1916_v46 }
 0x360   :  { %v532_v59 = vadd.f32 %v530_v58, %v1918_v49  ;;  %v537_v62 = vsel %vm329_vm2, %v533_v61, -inf }
 0x362   :  { %v534_v60 = vsel %vm329_vm2, %v532_v59, -inf }
 0x363   :  { %535 = vmax.xlane.f32.xlu0 %v534_v60 }
 0x367   :  { %538 = vmax.xlane.f32.xlu0 %v537_v62 }
 0x36a   :  { %352 = vrot.lane.b32.xlu1 %v1894_v38, %s1759_s5 }
 0x36e   :  { %558 = vrot.lane.b32.xlu1 %v1892_v36, %s1760_s23 }
 0x372   :  { %556 = vrot.lane.b32.xlu1 %v1894_v38, %s1760_s23 }
 0x37d   :  { %354 = vrot.lane.b32.xlu0 %v1892_v36, %s1759_s5 }
 0x3e2   :  { %v335_v63 = vpop.xlane.xlu1 %334 }
 0x3e3   :  { %v337_v2 = vsub.f32 %v328_v51, %v335_v63 }
 0x3e4   :  { %v332_v3 = vpop.xlane.xlu0 %331 }
 0x3e5   :  { %v340_v4 = vmul.f32 1.442695, %v337_v2  ;;  %v336_v5 = vsub.f32 %v327_v53, %v332_v3 }
 0x3e6   :  { %v353_v12 = vpop.permute.xlu1 %352 }
 0x3e7   :  { %1650 = vpow2.f32 %v340_v4  ;;  %v338_v6 = vmul.f32 1.442695, %v336_v5 }
 0x3e9   :  { %1652 = vpow2.f32 %v338_v6 }
 0x3ea   :  { %v559_v19 = vpop.permute.xlu1 %558 }
 0x3ec   :  { %v536_v7 = vpop.xlane.xlu0 %535 }
 0x3ed   :  { %v540_v8 = vsub.f32 %v532_v59, %v536_v7 }
 0x3ee   :  { %v557_v24 = vpop.permute.xlu1 %556 }
 0x3ef   :  { %v542_v9 = vmul.f32 1.442695, %v540_v8 }
 0x3f0   :  { %v539_v10 = vpop.xlane.xlu0 %538 }
 0x3f1   :  { %1654 = vpow2.f32 %v542_v9  ;;  %v541_v11 = vsub.f32 %v533_v61, %v539_v10 }
 0x3f3   :  { %v544_v13 = vmul.f32 1.442695, %v541_v11 }
 0x3f4   :  { %v1651_v14 = vpop.eup %1650  ;;  %v355_v15 = vpop.permute.xlu0 %354 }
 0x3f5   :  { %1656 = vpow2.f32 %v544_v13  ;;  %1538 = vmatprep.subr.mxu0 %v355_v15  ;;  %v345_v16 = vsel %vm329_vm2, %v1651_v14, 0.0 }
 0x3f6   :  { %v1653_v17 = vpop.eup %1652  ;;  %346 = vadd.xlane.f32.xlu1 %v345_v16  ;;  %1539 = vmatpush3.msra.mxu0 %v355_v15 }
 0x3f7   :  { %1540 = vmatprep.subr.mxu0 %v353_v12  ;;  %v342_v18 = vsel %vm329_vm2, %v1653_v17, 0.0 }
 0x3f8   :  { %343 = vadd.xlane.f32.xlu0 %v342_v18  ;;  %1541 = vmatpush3.msra.mxu0 %v353_v12 }
 0x3f9   :  { %1552 = vmatprep.subr.mxu0 %v559_v19 }
 0x3fe   :  { %v1655_v20 = vpop.eup %1654 }
 0x3ff   :  { %v546_v21 = vsel %vm329_vm2, %v1655_v20, 0.0 }
 0x400   :  { %547 = vadd.xlane.f32.xlu0 %v546_v21 }
 0x402   :  { %v1657_v22 = vpop.eup %1656 }
 0x403   :  { %v549_v23 = vsel %vm329_vm2, %v1657_v22, 0.0 }
 0x404   :  { %550 = vadd.xlane.f32.xlu1 %v549_v23 }
 0x415   :  { %647 = vrot.lane.b32.xlu1 %v1894_v38, %s1761_s24 }
 0x416   :  { %649 = vrot.lane.b32.xlu0 %v1892_v36, %s1761_s24 }
 0x419   :  { %645 = vrot.lane.b32.xlu1 %v1892_v36, %s1762_s0 }
 0x41a   :  { %643 = vrot.lane.b32.xlu0 %v1894_v38, %s1762_s0 }
 0x47f   :  { %v347_v25 = vpop.xlane.xlu1 %346 }
 0x480   :  { %1658 = vrcp.f32 %v347_v25 }
 0x481   :  { %v344_v26 = vpop.xlane.xlu0 %343 }
 0x482   :  { %1660 = vrcp.f32 %v344_v26 }
 0x489   :  { %v548_v27 = vpop.xlane.xlu0 %547 }
 0x48a   :  { %1662 = vrcp.f32 %v548_v27 }
 0x48d   :  { %v551_v28 = vpop.xlane.xlu1 %550  ;;  %v1659_v29 = vpop.eup %1658 }
 0x48e   :  { %1664 = vrcp.f32 %v551_v28  ;;  %v351_v32 = vmul.f32 %v1659_v29, %v1651_v14  ;;  %v650_v33 = vpop.permute.xlu0 %649 }
 0x48f   :  { %v1661_v30 = vpop.eup %1660 }
 0x490   :  { %v349_v31 = vmul.f32 %v1661_v30, %v1653_v17 }
 0x491   :  { %v648_v41 = vpop.permute.xlu1 %647 }
 0x492   :  { %1542 = vmatprep.mubr.msk.f32.mxu0 %vm329_vm2, %v349_v31  ;;  %v644_v40 = vpop.permute.xlu0 %643 }
 0x493   :  { %1543 = vmatmul.mubr.msk.f32.vlgmr.msra.gmra.mxu0 %vm329_vm2, %v351_v32 }
 0x494   :  { %1553 = vmatpush3.msra.mxu0 %v559_v19 }
 0x495   :  { %1554 = vmatprep.subr.mxu0 %v557_v24  ;;  %v646_v42 = vpop.permute.xlu1 %645 }
 0x496   :  { %1555 = vmatpush3.msra.mxu0 %v557_v24 }
 0x497   :  { %v1663_v34 = vpop.eup %1662  ;;  %1559 = vmatprep.subr.msk.mxu0 %vm241_vm1, %v650_v33 }
 0x498   :  { %v553_v35 = vmul.f32 %v1663_v34, %v1655_v20 }
 0x49a   :  { %1556 = vmatprep.mubr.msk.f32.mxu0 %vm329_vm2, %v553_v35 }
 0x49b   :  { %v1665_v37 = vpop.eup %1664 }
 0x49c   :  { %v555_v39 = vmul.f32 %v1665_v37, %v1657_v22 }
 0x49e   :  { %1557 = vmatmul.mubr.msk.f32.vlgmr.msra.gmra.mxu0 %vm329_vm2, %v555_v39 }
 0x49f   :  { %1560 = vmatpush3.xpose.msk.msra.mxu0 %vm241_vm1, %v650_v33  ;;  %1563 = vmatprep.mubr.msk.f32.mxu0 %vm241_vm1, %v644_v40 }
 0x4a0   :  { %1561 = vmatprep.subr.msk.mxu0 %vm241_vm1, %v648_v41 }
 0x4a3   :  { %1562 = vmatpush3.xpose.msk.msra.mxu0 %vm241_vm1, %v648_v41 }
 0x4a6   :  { %1564 = vmatmul.mubr.msk.f32.vlgmr.msra.gmra.mxu0 %vm241_vm1, %v646_v42 }
 0x553   :  { %v1950_v43 = vpop.f32.mrf.mxu0 }
 0x555   :  { %v1952_v44 = vpop.f32.mrf.mxu0 }
 0x55e   :  { %v1954_v45 = vpop.f32.mrf.mxu0 }
 0x560   :  { %v1956_v47 = vpop.f32.mrf.mxu0 }
 0x566   :  { %v1565_v48 = vpop.f32.mrf.mxu0 }
 0x567   :  { %v735_v50 = vmul.f32 0.35355338, %v1565_v48  ;;  %v1083_v48 = vld [vmem:[%s2095_s6 + $0x8] sm:$0xff] }
 0x568   :  { %v725_v51 = vpop.f32.mrf.mxu0 }
 0x569   :  { %v734_v52 = vmul.f32 0.35355338, %v725_v51  ;;  %v737_v53 = vadd.f32 %v735_v50, %v1916_v46  ;;  %v1082_v50 = vld [vmem:[%s2095_s6] sm:$0xff] }
 0x56b   :  { %v741_v54 = vsel %vm329_vm2, %v737_v53, -inf  ;;  %v736_v55 = vadd.f32 %v734_v52, %v1918_v49 }
 0x56c   :  { %742 = vmax.xlane.f32.xlu1 %v741_v54 }
 0x56d   :  { %v738_v56 = vsel %vm329_vm2, %v736_v55, -inf }
 0x56e   :  { %739 = vmax.xlane.f32.xlu0 %v738_v56 }
 0x57d   :  { %760 = vrot.lane.b32.xlu1 %v1894_v38, %s1763_s1 }
 0x581   :  { %853 = vrot.lane.b32.xlu1 %v1892_v36, %s1764_s25 }
 0x585   :  { %851 = vrot.lane.b32.xlu1 %v1894_v38, %s1764_s25 }
 0x589   :  { %849 = vrot.lane.b32.xlu1 %v1892_v36, %s1765_s26 }
 0x5f5   :  { %v743_v57 = vpop.xlane.xlu1 %742 }
 0x5f6   :  { %v745_v58 = vsub.f32 %v737_v53, %v743_v57 }
 0x5f7   :  { %v740_v59 = vpop.xlane.xlu0 %739 }
 0x5f8   :  { %v748_v60 = vmul.f32 1.442695, %v745_v58  ;;  %v744_v61 = vsub.f32 %v736_v55, %v740_v59 }
 0x5f9   :  { %v761_v7 = vpop.permute.xlu1 %760 }
 0x5fa   :  { %1666 = vpow2.f32 %v748_v60  ;;  %v746_v62 = vmul.f32 1.442695, %v744_v61 }
 0x5fc   :  { %1668 = vpow2.f32 %v746_v62 }
 0x5fd   :  { %v854_v9 = vpop.permute.xlu1 %853 }
 0x601   :  { %v852_v15 = vpop.permute.xlu1 %851 }
 0x605   :  { %v850_v16 = vpop.permute.xlu1 %849 }
 0x607   :  { %v1667_v63 = vpop.eup %1666 }
 0x608   :  { %v753_v2 = vsel %vm329_vm2, %v1667_v63, 0.0 }
 0x609   :  { %v1669_v3 = vpop.eup %1668  ;;  %754 = vadd.xlane.f32.xlu0 %v753_v2 }
 0x60a   :  { %v750_v4 = vsel %vm329_vm2, %v1669_v3, 0.0 }
 0x60d   :  { %751 = vadd.xlane.f32.xlu0 %v750_v4 }
 0x623   :  { %762 = vrot.lane.b32.xlu0 %v1892_v36, %s1763_s1 }
 0x627   :  { %847 = vrot.lane.b32.xlu0 %v1894_v38, %s1765_s26 }
 0x692   :  { %v755_v5 = vpop.xlane.xlu0 %754 }
 0x693   :  { %1670 = vrcp.f32 %v755_v5 }
 0x696   :  { %v752_v6 = vpop.xlane.xlu0 %751 }
 0x697   :  { %1672 = vrcp.f32 %v752_v6 }
 0x69a   :  { %v763_v8 = vpop.permute.xlu0 %762 }
 0x69b   :  { %1566 = vmatprep.subr.mxu1 %v763_v8 }
 0x69c   :  { %1567 = vmatpush3.msra.mxu1 %v763_v8 }
 0x69d   :  { %1568 = vmatprep.subr.mxu1 %v761_v7 }
 0x69e   :  { %1569 = vmatpush3.msra.mxu1 %v761_v7  ;;  %v848_v14 = vpop.permute.xlu0 %847 }
 0x69f   :  { %1573 = vmatprep.subr.msk.mxu1 %vm241_vm1, %v854_v9 }
 0x6a0   :  { %v1671_v10 = vpop.eup %1670 }
 0x6a1   :  { %v759_v13 = vmul.f32 %v1671_v10, %v1667_v63 }
 0x6a4   :  { %v1673_v11 = vpop.eup %1672 }
 0x6a5   :  { %v757_v12 = vmul.f32 %v1673_v11, %v1669_v3 }
 0x6a7   :  { %1570 = vmatprep.mubr.msk.f32.mxu1 %vm329_vm2, %v757_v12 }
 0x6a8   :  { %1571 = vmatmul.mubr.msk.f32.vlgmr.msra.gmra.mxu1 %vm329_vm2, %v759_v13 }
 0x6a9   :  { %1574 = vmatpush3.xpose.msk.msra.mxu1 %vm241_vm1, %v854_v9  ;;  %1577 = vmatprep.mubr.msk.f32.mxu1 %vm241_vm1, %v848_v14 }
 0x6aa   :  { %1575 = vmatprep.subr.msk.mxu1 %vm241_vm1, %v852_v15 }
 0x6ad   :  { %1576 = vmatpush3.xpose.msk.msra.mxu1 %vm241_vm1, %v852_v15 }
 0x6b0   :  { %1578 = vmatmul.mubr.msk.f32.vlgmr.msra.gmra.mxu1 %vm241_vm1, %v850_v16 }
 0x768   :  { %v1572_v17 = vpop.f32.mrf.mxu1 }
 0x76a   :  { %v838_v18 = vpop.f32.mrf.mxu1 }
 0x770   :  { %v1579_v19 = vpop.f32.mrf.mxu1 }
 0x771   :  { %v939_v20 = vmul.f32 0.35355338, %v1579_v19  ;;  %v87_v19 = vld [vmem:[%s2099_s10 + $0x10] sm:$0xff] }
 0x772   :  { %v929_v21 = vpop.f32.mrf.mxu1 }
 0x773   :  { %v938_v22 = vmul.f32 0.35355338, %v929_v21  ;;  %v941_v23 = vadd.f32 %v939_v20, %v1916_v46  ;;  %v86_v20 = vld [vmem:[%s2099_s10 + $0x8] sm:$0xff]  ;;  %v85_v21 = vld [vmem:[%s2099_s10] sm:$0xff] }
 0x775   :  { %v945_v24 = vsel %vm329_vm2, %v941_v23, -inf  ;;  %v940_v25 = vadd.f32 %v938_v22, %v1918_v49  ;;  %v97_v22 = vld [vmem:[%s2101_s12 + $0x38] sm:$0xff] }
 0x776   :  { %946 = vmax.xlane.f32.xlu1 %v945_v24  ;;  %v95_v24 = vld [vmem:[%s2101_s12 + $0x28] sm:$0xff] }
 0x777   :  { %v942_v26 = vsel %vm329_vm2, %v940_v25, -inf }
 0x778   :  { %943 = vmax.xlane.f32.xlu0 %v942_v26 }
 0x787   :  { %964 = vrot.lane.b32.xlu1 %v1894_v38, %s1766_s27 }
 0x78b   :  { %1053 = vrot.lane.b32.xlu1 %v1956_v47, %s1754_s17  ;;  %v1084_v47 = vld [vmem:[%s2095_s6 + $0x10] sm:$0xff] }
 0x78f   :  { %1055 = vrot.lane.b32.xlu1 %v1954_v45, %s1754_s17 }
 0x793   :  { %1063 = vrot.lane.b32.xlu1 %v1572_v17, %s1767_s28 }
 0x7ff   :  { %v947_v46 = vpop.xlane.xlu1 %946 }
 0x800   :  { %v949_v27 = vsub.f32 %v941_v23, %v947_v46  ;;  %v96_v23 = vld [vmem:[%s2101_s12 + $0x30] sm:$0xff] }
 0x801   :  { %v944_v28 = vpop.xlane.xlu0 %943 }
 0x802   :  { %v952_v29 = vmul.f32 1.442695, %v949_v27  ;;  %v948_v49 = vsub.f32 %v940_v25, %v944_v28  ;;  %v94_v25 = vld [vmem:[%s2101_s12 + $0x20] sm:$0xff] }
 0x803   :  { %v965_v39 = vpop.permute.xlu1 %964 }
 0x804   :  { %1674 = vpow2.f32 %v952_v29  ;;  %v950_v30 = vmul.f32 1.442695, %v948_v49 }
 0x806   :  { %1676 = vpow2.f32 %v950_v30 }
 0x807   :  { %v1054_v53 = vpop.permute.xlu1 %1053 }
 0x808   :  { %v1075_v57 = vsel %vm241_vm1, %v1952_v44, %v1054_v53  ;;  %v1451_v44 = vld [vmem:[%s2096_s7] ss:$0 sm:$0xff] }
 0x80b   :  { %v1056_v54 = vpop.permute.xlu1 %1055 }
 0x80c   :  { %v1076_v59 = vsel %vm241_vm1, %v1950_v43, %v1056_v54 }
 0x80f   :  { %v1064_v55 = vpop.permute.xlu1 %1063 }
 0x810   :  { %v1078_v62 = vsel %vm329_vm2, %v1076_v59, %v1064_v55  ;;  %v1459_v55 = vld [vmem:[%s2102_s13] ss:$0 sm:$0xff] }
 0x811   :  { %v1675_v31 = vpop.eup %1674 }
 0x812   :  { %v957_v32 = vsel %vm329_vm2, %v1675_v31, 0.0 }
 0x813   :  { %v1677_v38 = vpop.eup %1676  ;;  %958 = vadd.xlane.f32.xlu0 %v957_v32 }
 0x814   :  { %v954_v33 = vsel %vm329_vm2, %v1677_v38, 0.0 }
 0x817   :  { %955 = vadd.xlane.f32.xlu0 %v954_v33 }
 0x82d   :  { %966 = vrot.lane.b32.xlu0 %v1892_v36, %s1766_s27  ;;  %v1085_v36 = vld [vmem:[%s2095_s6 + $0x18] sm:$0xff] }
 0x831   :  { %1061 = vrot.lane.b32.xlu0 %v838_v18, %s1767_s28  ;;  %v88_v18 = vld [vmem:[%s2099_s10 + $0x18] sm:$0xff] }
 0x832   :  { %1598 = vmatprep.subr.mxu1 %v88_v18 }
 0x833   :  { %1599 = vmatpush3.msra.mxu1 %v88_v18 }
 0x834   :  { %1600 = vmatprep.subr.mxu1 %v87_v19 }
 0x835   :  { %1601 = vmatpush3.msra.mxu1 %v87_v19 }
 0x836   :  { %1602 = vmatprep.subr.mxu1 %v86_v20 }
 0x837   :  { %1603 = vmatpush3.msra.mxu1 %v86_v20 }
 0x838   :  { %1604 = vmatprep.subr.mxu1 %v85_v21 }
 0x839   :  { %1605 = vmatpush3.msra.mxu1 %v85_v21 }
 0x89c   :  { %v959_v34 = vpop.xlane.xlu0 %958 }
 0x89d   :  { %1678 = vrcp.f32 %v959_v34 }
 0x8a0   :  { %v956_v35 = vpop.xlane.xlu0 %955 }
 0x8a1   :  { %1680 = vrcp.f32 %v956_v35 }
 0x8a4   :  { %v967_v37 = vpop.permute.xlu0 %966 }
 0x8a5   :  { %1580 = vmatprep.subr.mxu0 %v967_v37 }
 0x8a6   :  { %1581 = vmatpush3.msra.mxu0 %v967_v37 }
 0x8a7   :  { %1582 = vmatprep.subr.mxu0 %v965_v39 }
 0x8a8   :  { %1583 = vmatpush3.msra.mxu0 %v965_v39  ;;  %v1062_v56 = vpop.permute.xlu0 %1061 }
 0x8a9   :  { %1587 = vmatprep.subr.mxu0 %v1085_v36  ;;  %v1077_v60 = vsel %vm329_vm2, %v1075_v57, %v1062_v56 }
 0x8aa   :  { %v1679_v40 = vpop.eup %1678 }
 0x8ab   :  { %v963_v45 = vmul.f32 %v1679_v40, %v1675_v31  ;;  %v1452_v31 = vld [vmem:[%s2097_s8] ss:$0 sm:$0xff] }
 0x8ae   :  { %v1681_v41 = vpop.eup %1680 }
 0x8af   :  { %v961_v42 = vmul.f32 %v1681_v41, %v1677_v38  ;;  %v1453_v38 = vld [vmem:[%s2098_s9] ss:$0 sm:$0xff]  ;;  %v93_v41 = vld [vmem:[%s2101_s12 + $0x18] sm:$0xff] }
 0x8b1   :  { %1584 = vmatprep.mubr.msk.f32.mxu0 %vm329_vm2, %v961_v42  ;;  %v92_v42 = vld [vmem:[%s2101_s12 + $0x10] sm:$0xff] }
 0x8b2   :  { %1585 = vmatmul.mubr.msk.f32.vlgmr.msra.gmra.mxu0 %vm329_vm2, %v963_v45  ;;  %v91_v45 = vld [vmem:[%s2101_s12 + $0x8] sm:$0xff] }
 0x8b3   :  { %1588 = vmatpush3.msra.mxu0 %v1085_v36  ;;  %v90_v36 = vld [vmem:[%s2101_s12] sm:$0xff]  ;;  %s1769_s12 = smov [#allocation7]  }
 0x8b4   :  { %1589 = vmatprep.subr.mxu0 %v1084_v47  ;;  %s1407_s25 = sshll.u32 %s1769_s12, 4  ;;  %s1408_s25 = int_to_ptr.vmem [resolvable:$true] %s1407_s25 }
 0x8b5   :  { %1590 = vmatpush3.msra.mxu0 %v1084_v47  ;;  %v1454_v47 = vld [vmem:[%s2100_s11] ss:$0 sm:$0xff]  ;;  %s1726_s11 = scalar_lea.vmem %s1408_s25, 256  ;;  %p1731_p11 = scmp.lt.s32.totalorder %s1408_s25, %s1408_s25 }
 0x8b6   :  { %1591 = vmatprep.subr.mxu0 %v1083_v48  ;;  %p1727_p10 = scmp.ne.s32.totalorder %s1408_s25, %s1726_s11  ;;  %p1732_p12 = scmp.lt.s32.totalorder %s1726_s11, %s1726_s11 }
 0x8b7   :  { %1592 = vmatpush3.msra.mxu0 %v1083_v48 }
 0x8b8   :  { %1593 = vmatprep.subr.mxu0 %v1082_v50  ;;  %p1733_p13 = por %p1732_p12, %p1731_p11 }
 0x8b9   :  { %1594 = vmatpush3.msra.mxu0 %v1082_v50 }
 0x8ba   :  { %1609 = vmatprep.subr.mxu0 %v97_v22  ;;  %p1734_p0 = pnand %p1733_p13, %p1727_p10 }
 0x972   :  { %v1586_v51 = vpop.f32.mrf.mxu0 }
 0x973   :  { %1071 = vrot.lane.b32.xlu1 %v1586_v51, %s1768_s2 }
 0x974   :  { %v1042_v52 = vpop.f32.mrf.mxu0 }
 0x975   :  { %1069 = vrot.lane.b32.xlu0 %v1042_v52, %s1768_s2 }
 0x9e5   :  { %v1072_v58 = vpop.permute.xlu1 %1071 }
 0x9e6   :  { %v1081_v2 = vsel %vm1079_vm3, %v1078_v62, %v1072_v58 }
 0x9e7   :  { %v1070_v61 = vpop.permute.xlu0 %1069 }
 0x9e8   :  { %v1080_v63 = vsel %vm1079_vm3, %v1077_v60, %v1070_v61 }
 0x9e9   :  { %1595 = vmatprep.mubr.msk.f32.mxu0 %vm99_vm0, %v1080_v63 }
 0x9ea   :  { %1596 = vmatmul.mubr.msk.f32.vlgmr.msra.gmra.mxu0 %vm99_vm0, %v1081_v2 }
 0x9eb   :  { %1610 = vmatpush3.msra.mxu0 %v97_v22 }
 0x9ec   :  { %1611 = vmatprep.subr.mxu0 %v96_v23 }
 0x9ed   :  { %1612 = vmatpush3.msra.mxu0 %v96_v23 }
 0x9ee   :  { %1613 = vmatprep.subr.mxu0 %v95_v24 }
 0x9ef   :  { %1614 = vmatpush3.msra.mxu0 %v95_v24 }
 0x9f0   :  { %1615 = vmatprep.subr.mxu0 %v94_v25 }
 0x9f1   :  { %1616 = vmatpush3.msra.mxu0 %v94_v25 }
 0x9f2   :  { %1617 = vmatprep.subr.mxu0 %v93_v41 }
 0x9f3   :  { %1618 = vmatpush3.msra.mxu0 %v93_v41 }
 0x9f4   :  { %1619 = vmatprep.subr.mxu0 %v92_v42 }
 0x9f5   :  { %1620 = vmatpush3.msra.mxu0 %v92_v42 }
 0x9f6   :  { %1621 = vmatprep.subr.mxu0 %v91_v45 }
 0x9f7   :  { %1622 = vmatpush3.msra.mxu0 %v91_v45 }
 0x9f8   :  { %1623 = vmatprep.subr.mxu0 %v90_v36 }
 0x9f9   :  { %1624 = vmatpush3.msra.mxu0 %v90_v36 }
 0xaaa   :  { %v1597_v3 = vpop.f32.mrf.mxu0 }
 0xaab   :  { %v1168_v4 = vadd.f32 %v1597_v3, %v1859_v1 }
 0xaac   :  { %v1158_v5 = vpop.f32.mrf.mxu0 }
 0xaad   :  { %v2016_v43 = vadd.f32 %v1451_v44, %v1168_v4  ;;  %v1167_v6 = vadd.f32 %v1158_v5, %v1857_v0 }
 0xaaf   :  { %v2019_v7 = vadd.f32 %v1451_v44, %v1167_v6  ;;  %v1180_v8 = vsel %vm99_vm0, %v2016_v43, 0.0 }
 0xab0   :  { %1181 = vadd.xlane.f32.xlu1 %v1180_v8 }
 0xab1   :  { %v1177_v9 = vsel %vm99_vm0, %v2019_v7, 0.0 }
 0xab2   :  { %1178 = vadd.xlane.f32.xlu0 %v1177_v9 }
 0xb39   :  { %v1182_v10 = vpop.xlane.xlu1 %1181 }
 0xb3a   :  { %v1184_v11 = vmul.f32 0.03125, %v1182_v10 }
 0xb3b   :  { %v1179_v12 = vpop.xlane.xlu0 %1178 }
 0xb3c   :  { %v1183_v13 = vmul.f32 0.03125, %v1179_v12  ;;  %v1186_v1 = vsub.f32 %v2016_v43, %v1184_v11 }
 0xb3e   :  { %v1185_v14 = vsub.f32 %v2019_v7, %v1183_v13  ;;  %v1188_v16 = vmul.f32 %v1186_v1, %v1186_v1 }
 0xb40   :  { %v1187_v15 = vmul.f32 %v1185_v14, %v1185_v14  ;;  %v1192_v17 = vsel %vm99_vm0, %v1188_v16, 0.0 }
 0xb42   :  { %v1189_v0 = vsel %vm99_vm0, %v1187_v15, 0.0 }
 0xb43   :  { %1190 = vadd.xlane.f32.xlu0 %v1189_v0 }
 0xb47   :  { %1193 = vadd.xlane.f32.xlu0 %v1192_v17 }
 0xbcc   :  { %v1191_v26 = vpop.xlane.xlu0 %1190 }
 0xbcd   :  { %v1195_v46 = vmul.f32 0.03125, %v1191_v26 }
 0xbcf   :  { %v1197_v27 = vadd.f32 1e-05, %v1195_v46 }
 0xbd0   :  { %v1194_v28 = vpop.xlane.xlu0 %1193 }
 0xbd1   :  { %1682 = vrsqrt.f32 %v1197_v27  ;;  %v1196_v29 = vmul.f32 0.03125, %v1194_v28 }
 0xbd3   :  { %v1198_v49 = vadd.f32 1e-05, %v1196_v29 }
 0xbd5   :  { %1684 = vrsqrt.f32 %v1198_v49 }
 0xbde   :  { %v1683_v30 = vpop.eup %1682 }
 0xbdf   :  { %v1201_v32 = vmul.f32 %v1683_v30, %v1185_v14 }
 0xbe1   :  { %v1209_v33 = vmul.f32 %v1452_v31, %v1201_v32 }
 0xbe2   :  { %v1685_v34 = vpop.eup %1684 }
 0xbe3   :  { %v1202_v35 = vmul.f32 %v1685_v34, %v1186_v1  ;;  %v1217_v37 = vadd.f32 %v1453_v38, %v1209_v33 }
 0xbe5   :  { %v1210_v39 = vmul.f32 %v1452_v31, %v1202_v35  ;;  %1606 = vmatprep.mubr.msk.f32.mxu1 %vm99_vm0, %v1217_v37 }
 0xbe7   :  { %v1218_v40 = vadd.f32 %v1453_v38, %v1210_v39 }
 0xbe9   :  { %1607 = vmatmul.mubr.msk.f32.vlgmr.msra.gmra.mxu1 %vm99_vm0, %v1218_v40 }
 0xca9   :  { %v1608_v48 = vpop.f32.mrf.mxu1 }
 0xcaa   :  { %v1303_v50 = vadd.f32 %v1608_v48, %v1454_v47 }
 0xcab   :  { %v1297_v51 = vpop.f32.mrf.mxu1 }
 0xcac   :  { %v1298_v52 = vadd.f32 %v1454_v47, %v1297_v51  ;;  %v1307_v54 = vmax.f32 %v1303_v50, 0.0 }
 0xcae   :  { %v1306_v53 = vmax.f32 %v1298_v52, 0.0 }
 0xcb0   :  { %1625 = vmatprep.mubr.msk.f32.mxu0 %vm1308_vm4, %v1306_v53 }
 0xcb1   :  { %1626 = vmatmul.mubr.msk.f32.vlgmr.msra.gmra.mxu0 %vm1308_vm4, %v1307_v54 }
 0xd71   :  { %v1627_v56 = vpop.f32.mrf.mxu0 }
 0xd72   :  { %v1391_v57 = vadd.f32 %v1627_v56, %v2016_v43 }
 0xd73   :  { %v1381_v58 = vpop.f32.mrf.mxu0 }
 0xd74   :  { %v1399_v59 = vadd.f32 %v1459_v55, %v1391_v57  ;;  %v1390_v60 = vadd.f32 %v1381_v58, %v2019_v7 }
 0xd76   :  { %1401 = vst.msk [vmem:[#allocation7 + $0x8] sm:$0xff] %vm99_vm0, %v1399_v59  ;;  %v1398_v61 = vadd.f32 %v1459_v55, %v1390_v60 }
 0xd78   :  { %1400 = vst.msk [vmem:[#allocation7] sm:$0xff] %vm99_vm0, %v1398_v61 }
 0xd79   :  { %1737 = shalt.err (!%p1734_p0)
}
 0xd7a   :  { %1413 = dma.vmem_to_hbm [thread:$0]  %s1408_s25, 256, %s2103_s14, [#allocation4], %s1753_s16, %s1753_s16, %s1754_s17  }
 0xd7b   :  { %1750 = dma.done.wait [#allocation4], 256  }
 0xd7c   :  { %1751 = vsyncadd [#allocation4], 4294967040 }
 0xd7d   :  { %1417 = vsyncpa [#allocation3], 1 }
 0xd7e   :  { %1418 = vsyncpa [#allocation6], 1 }
 0xd7f   :  { %1419 = vsyncpa [#allocation4], 1 }

</bundles_post_ra>
